<compile_context>
chip_gen: v6e
topology: v6e:2x2x1
jax: 0.10.0
libtpu: 0.0.40
codegen_flags: <defaults>
</compile_context>

<pallas_src>
import functools

import jax
import jax.numpy as jnp
from jax.experimental import pallas as pl
from jax.experimental.pallas import tpu as pltpu

DIM_HIDDEN = 64
NUM_BINS = 200               # divisible by 8 -> sublane-aligned, no padding
MIN_VALUE = -1.1
MAX_VALUE = 1.1
RMS_EPS = float(jnp.finfo(jnp.float32).eps)  # torch nn.RMSNorm(eps=None) default


def _silu(x, elem_dtype=jnp.float32):
    # Sigmoid on the EUP in elem_dtype (bf16 doubles EUP throughput on
    # v6e/v7x); the multiply and all downstream math stay f32.
    return x * jax.nn.sigmoid(x.astype(elem_dtype)).astype(jnp.float32)


def _round_up(a, b):
    return (a + b - 1) // b * b


def mlp_hlgauss_kernel(x_ref, w1_ref, b1_ref, w2_ref, b2_ref, w3_ref, b3_ref,
                       wp_ref, red_ref, out_ref, *, mxu_dtype, elem_dtype, exact):
    """Transposed layout: activations are (features, TM); M rides the lane axis."""
    x = x_ref[0]                                   # (1, TM) f32

    # Linear(1, H): outer product + bias -> (H, TM), then SiLU (EUP).
    h = _silu(w1_ref[...] * x + b1_ref[...], elem_dtype)

    # Linear(H, H) + SiLU  (MXU, f32 accumulate).
    h = _silu(jnp.dot(w2_ref[...], h.astype(mxu_dtype),
                      preferred_element_type=jnp.float32) + b2_ref[...], elem_dtype)

    # Linear(H, H) + SiLU  (MXU).
    h = _silu(jnp.dot(w3_ref[...], h.astype(mxu_dtype),
                      preferred_element_type=jnp.float32) + b3_ref[...], elem_dtype)

    # RMSNorm over the hidden axis (axis 0 = sublanes); the learnable scale
    # gamma is folded into wp by the wrapper.
    ms = jnp.mean(h * h, axis=0, keepdims=True)    # (1, TM) f32
    h = h * jax.lax.rsqrt(ms + RMS_EPS)

    # Linear(H, NUM_BINS, bias=False) -> logits (NUM_BINS, TM)  (MXU).
    logits = jnp.dot(wp_ref[...], h.astype(mxu_dtype),
                     preferred_element_type=jnp.float32)

    # Stable softmax + HL-Gauss expectation.
    m = jnp.max(logits, axis=0, keepdims=True)     # (1, TM)
    e = jnp.exp((logits - m).astype(elem_dtype))   # EUP; bf16 on v6e/v7x
    # red_ref rows: [0]=bin centers, [1]=ones, rest 0.  One small MXU dot gives
    # the expectation numerator and the softmax denominator at once: (8, TM).
    nd = jnp.dot(red_ref[...], e.astype(mxu_dtype),
                 preferred_element_type=jnp.float32)
    pred = nd[0:1, :] * pl.reciprocal(nd[1:2, :], approx=not exact)   # (1, TM)

    out_ref[...] = pred[None]                      # lane-dense (1, 1, TM) store


def mlp_forward(x, params, *, tile_m=2048, mxu_dtype=jnp.bfloat16,
                elem_dtype=jnp.float32):
    """x: arbitrary-shaped f32 array.  Returns prediction with the same shape.

    mxu_dtype: dtype of matmul operands (bf16 default; f32 = exact mode).
    elem_dtype: dtype for sigmoid/exp EUP math (bf16 worthwhile on v6e/v7x;
                keep f32 on v5e, whose VPU/EUP have no bf16).
    """
    orig_shape = x.shape
    xf = x.reshape(-1).astype(jnp.float32)
    m_total = xf.shape[0]

    # Lane tile: large for throughput, clamped for tiny inputs, and clamped so
    # that >=2 tiles exist when possible (spans both v7x TensorCores).
    m128 = _round_up(max(m_total, 1), 128)
    tm = min(tile_m, m128)
    if m128 >= 256:
        tm = min(tm, _round_up((m128 + 1) // 2, 128))
    tm = _round_up(max(tm, 128), 128)

    m = _round_up(max(m_total, 1), tm)
    if m != m_total:
        xf = jnp.pad(xf, (0, m - m_total))         # tail-only pad
        # TODO(synk): for very large ragged M a tail-only second call would
        # avoid the whole-array jnp.pad copy.
    num_tiles = m // tm
    x_slab = xf.reshape(num_tiles, 1, tm)          # lane-dense input slab

    w1, b1, w2, b2, w3, b3, gamma, wp, red = params
    # Cast MXU weights once in the wrapper; fold the RMSNorm scale into wp.
    w2c = w2.astype(mxu_dtype)
    w3c = w3.astype(mxu_dtype)
    wpc = (wp * gamma.reshape(1, -1)).astype(mxu_dtype)
    redc = red.astype(mxu_dtype)

    exact = jnp.dtype(mxu_dtype) == jnp.dtype(jnp.float32)

    def full(a):  # whole (small) parameter resident for every grid step
        nd = a.ndim
        return pl.BlockSpec(a.shape, lambda i, _nd=nd: (0,) * _nd)

    cp_kwargs = dict(dimension_semantics=("parallel",))
    if tm > 2048:
        # v5e scoped-VMEM default is 16 MiB; larger tiles need an explicit cap.
        cp_kwargs["vmem_limit_bytes"] = 48 << 20

    out = pl.pallas_call(
        functools.partial(mlp_hlgauss_kernel, mxu_dtype=mxu_dtype,
                          elem_dtype=elem_dtype, exact=exact),
        out_shape=jax.ShapeDtypeStruct((num_tiles, 1, tm), jnp.float32),
        grid=(num_tiles,),
        in_specs=[
            pl.BlockSpec((1, 1, tm), lambda i: (i, 0, 0)),       # x slab row
            full(w1), full(b1),                                  # (H,1), (H,1)
            full(w2c), full(b2),                                 # (H,H), (H,1)
            full(w3c), full(b3),                                 # (H,H), (H,1)
            full(wpc),                                           # (NB,H)
            full(redc),                                          # (8,NB)
        ],
        out_specs=pl.BlockSpec((1, 1, tm), lambda i: (i, 0, 0)),
        compiler_params=pltpu.CompilerParams(**cp_kwargs),
    )(x_slab, w1, b1, w2c, b2, w3c, b3, wpc, redc)

    return out.reshape(-1)[:m_total].reshape(orig_shape)


def init_params(key, dim_hidden=DIM_HIDDEN, num_bins=NUM_BINS):
    """Deterministic synthetic parameters (PyTorch-Linear-style uniform init),
    stored in the kernel's transposed layout (out_features, in_features)."""
    ks = jax.random.split(key, 8)

    def lin(kw, kb, fan_in, fan_out, bias=True):
        bound = float(fan_in) ** -0.5
        w = jax.random.uniform(kw, (fan_out, fan_in), jnp.float32, -bound, bound)
        b = (jax.random.uniform(kb, (fan_out, 1), jnp.float32, -bound, bound)
             if bias else None)
        return w, b

    w1, b1 = lin(ks[0], ks[1], 1, dim_hidden)              # Linear(1, H)
    w2, b2 = lin(ks[2], ks[3], dim_hidden, dim_hidden)     # Linear(H, H)
    w3, b3 = lin(ks[4], ks[5], dim_hidden, dim_hidden)     # Linear(H, H)
    gamma = jnp.ones((dim_hidden, 1), jnp.float32)         # RMSNorm weight
    wp, _ = lin(ks[6], ks[7], dim_hidden, num_bins, bias=False)  # to_pred (200,H)

    support = jnp.linspace(MIN_VALUE, MAX_VALUE, num_bins + 1, dtype=jnp.float32)
    centers = (support[:-1] + support[1:]) * 0.5           # (200,)
    red = jnp.zeros((8, num_bins), jnp.float32)
    red = red.at[0].set(centers)                            # expectation weights
    red = red.at[1].set(1.0)                                # softmax denominator

    return (w1, b1, w2, b2, w3, b3, gamma, wp, red)


def mlp_forward_ref(x, params):
    """Plain-JAX f32 reference (faithful to the PyTorch module)."""
    w1, b1, w2, b2, w3, b3, gamma, wp, red = params
    hi = jax.lax.Precision.HIGHEST
    h = x.reshape(-1, 1).astype(jnp.float32)
    h = _silu(jnp.dot(h, w1.T, precision=hi) + b1.T)
    h = _silu(jnp.dot(h, w2.T, precision=hi) + b2.T)
    h = _silu(jnp.dot(h, w3.T, precision=hi) + b3.T)
    h = h * jax.lax.rsqrt(jnp.mean(h * h, -1, keepdims=True) + RMS_EPS)
    h = h * gamma.reshape(1, -1)
    logits = jnp.dot(h, wp.T, precision=hi)
    probs = jax.nn.softmax(logits, axis=-1)
    centers = red[0]
    return jnp.sum(probs * centers, -1).reshape(x.shape)


if __name__ == "__main__":
    key = jax.random.PRNGKey(0)
    kx, kp = jax.random.split(key)

    # Small input consistent with the module: scalar values per element.
    x = jax.random.uniform(kx, (8, 16), jnp.float32, -1.0, 1.0)  # batch=8, seq=16
    params = init_params(kp)

    ref = jax.block_until_ready(mlp_forward_ref(x, params))

    # 1) Exact mode: f32 MXU operands / f32 elementwise -> tight check.
    pred_f32 = jax.block_until_ready(
        mlp_forward(x, params, mxu_dtype=jnp.float32, elem_dtype=jnp.float32))
    assert pred_f32.shape == x.shape
    err32 = float(jnp.max(jnp.abs(pred_f32 - ref)))
    assert err32 < 1e-4, f"f32 max abs err = {err32}"

    # 2) Default performance mode: bf16 MXU operands, f32 elementwise.
    pred = jax.block_until_ready(mlp_forward(x, params))
    assert pred.shape == x.shape
    err16 = float(jnp.max(jnp.abs(pred - ref)))
    assert err16 < 5e-2, f"bf16-mxu max abs err = {err16}"

    # 3) Full-speed v6e/v7x mode: bf16 MXU + bf16 sigmoid/exp (looser check).
    pred_fast = jax.block_until_ready(
        mlp_forward(x, params, mxu_dtype=jnp.bfloat16, elem_dtype=jnp.bfloat16))
    errf = float(jnp.max(jnp.abs(pred_fast - ref)))
    assert errf < 1e-1, f"bf16-elem max abs err = {errf}"

    print("KERNEL_OK")
</pallas_src>

<mosaic_0001>
module attributes {stable_mosaic.version = 11 : i64} {
  func.func @mlp_hlgauss_kernel(%arg0: i32, %arg1: memref<1x1x128xf32, #tpu.memory_space<vmem>>, %arg2: memref<64x1xf32, #tpu.memory_space<vmem>>, %arg3: memref<64x1xf32, #tpu.memory_space<vmem>>, %arg4: memref<64x64xf32, #tpu.memory_space<vmem>>, %arg5: memref<64x1xf32, #tpu.memory_space<vmem>>, %arg6: memref<64x64xf32, #tpu.memory_space<vmem>>, %arg7: memref<64x1xf32, #tpu.memory_space<vmem>>, %arg8: memref<200x64xf32, #tpu.memory_space<vmem>>, %arg9: memref<8x200xf32, #tpu.memory_space<vmem>>, %arg10: memref<1x1x128xf32, #tpu.memory_space<vmem>>) attributes {dimension_semantics = [#tpu.dimension_semantics<parallel>], iteration_bounds = array<i64: 1>, scalar_prefetch = 0 : i64, scratch_operands = 0 : i64, tpu.core_type = #tpu.core_type<tc>, window_params = [{transform_indices = @transform_0, window_bounds = array<i64: 1, 1, 128>}, {pipeline_mode = #tpu.pipeline_mode<synchronous>, transform_indices = @transform_1, window_bounds = array<i64: 64, 1>}, {pipeline_mode = #tpu.pipeline_mode<synchronous>, transform_indices = @transform_2, window_bounds = array<i64: 64, 1>}, {pipeline_mode = #tpu.pipeline_mode<synchronous>, transform_indices = @transform_3, window_bounds = array<i64: 64, 64>}, {pipeline_mode = #tpu.pipeline_mode<synchronous>, transform_indices = @transform_4, window_bounds = array<i64: 64, 1>}, {pipeline_mode = #tpu.pipeline_mode<synchronous>, transform_indices = @transform_5, window_bounds = array<i64: 64, 64>}, {pipeline_mode = #tpu.pipeline_mode<synchronous>, transform_indices = @transform_6, window_bounds = array<i64: 64, 1>}, {pipeline_mode = #tpu.pipeline_mode<synchronous>, transform_indices = @transform_7, window_bounds = array<i64: 200, 64>}, {pipeline_mode = #tpu.pipeline_mode<synchronous>, transform_indices = @transform_8, window_bounds = array<i64: 8, 200>}, {transform_indices = @transform_9, window_bounds = array<i64: 1, 1, 128>}]} {
    %c0 = arith.constant 0 : index
    %c0_0 = arith.constant 0 : index
    %c0_1 = arith.constant 0 : index
    %0 = vector.load %arg1[%c0, %c0_0, %c0_1] : memref<1x1x128xf32, #tpu.memory_space<vmem>>, vector<1x1x128xf32>
    %1 = vector.shape_cast %0 : vector<1x1x128xf32> to vector<1x128xf32>
    %c0_2 = arith.constant 0 : index
    %c0_3 = arith.constant 0 : index
    %2 = vector.load %arg2[%c0_2, %c0_3] : memref<64x1xf32, #tpu.memory_space<vmem>>, vector<64x1xf32>
    %3 = vector.broadcast %2 : vector<64x1xf32> to vector<64x128xf32>
    %4 = vector.broadcast %1 : vector<1x128xf32> to vector<64x128xf32>
    %5 = arith.mulf %3, %4 : vector<64x128xf32>
    %c0_4 = arith.constant 0 : index
    %c0_5 = arith.constant 0 : index
    %6 = vector.load %arg3[%c0_4, %c0_5] : memref<64x1xf32, #tpu.memory_space<vmem>>, vector<64x1xf32>
    %7 = vector.broadcast %6 : vector<64x1xf32> to vector<64x128xf32>
    %8 = arith.addf %5, %7 : vector<64x128xf32>
    %9 = arith.negf %8 : vector<64x128xf32>
    %10 = math.exp %9 : vector<64x128xf32>
    %cst = arith.constant 1.000000e+00 : f32
    %11 = vector.broadcast %cst : f32 to vector<64x128xf32>
    %12 = arith.addf %11, %10 : vector<64x128xf32>
    %13 = arith.divf %11, %12 : vector<64x128xf32>
    %14 = arith.mulf %8, %13 : vector<64x128xf32>
    %c0_6 = arith.constant 0 : index
    %c0_7 = arith.constant 0 : index
    %15 = vector.load %arg4[%c0_6, %c0_7] : memref<64x64xf32, #tpu.memory_space<vmem>>, vector<64x64xf32>
    %cst_8 = arith.constant dense<0.000000e+00> : vector<64x128xf32>
    %16 = tpu.matmul %15, %14, %cst_8 {dimension_numbers = #tpu.dot_dimension_numbers<[1], [0], [0], [1], [0, 0, 1, 1], [], []>} : vector<64x64xf32>, vector<64x128xf32>, vector<64x128xf32> -> vector<64x128xf32>
    %c0_9 = arith.constant 0 : index
    %c0_10 = arith.constant 0 : index
    %17 = vector.load %arg5[%c0_9, %c0_10] : memref<64x1xf32, #tpu.memory_space<vmem>>, vector<64x1xf32>
    %18 = vector.broadcast %17 : vector<64x1xf32> to vector<64x128xf32>
    %19 = arith.addf %16, %18 : vector<64x128xf32>
    %20 = arith.negf %19 : vector<64x128xf32>
    %21 = math.exp %20 : vector<64x128xf32>
    %cst_11 = arith.constant 1.000000e+00 : f32
    %22 = vector.broadcast %cst_11 : f32 to vector<64x128xf32>
    %23 = arith.addf %22, %21 : vector<64x128xf32>
    %24 = arith.divf %22, %23 : vector<64x128xf32>
    %25 = arith.mulf %19, %24 : vector<64x128xf32>
    %c0_12 = arith.constant 0 : index
    %c0_13 = arith.constant 0 : index
    %26 = vector.load %arg6[%c0_12, %c0_13] : memref<64x64xf32, #tpu.memory_space<vmem>>, vector<64x64xf32>
    %cst_14 = arith.constant dense<0.000000e+00> : vector<64x128xf32>
    %27 = tpu.matmul %26, %25, %cst_14 {dimension_numbers = #tpu.dot_dimension_numbers<[1], [0], [0], [1], [0, 0, 1, 1], [], []>} : vector<64x64xf32>, vector<64x128xf32>, vector<64x128xf32> -> vector<64x128xf32>
    %c0_15 = arith.constant 0 : index
    %c0_16 = arith.constant 0 : index
    %28 = vector.load %arg7[%c0_15, %c0_16] : memref<64x1xf32, #tpu.memory_space<vmem>>, vector<64x1xf32>
    %29 = vector.broadcast %28 : vector<64x1xf32> to vector<64x128xf32>
    %30 = arith.addf %27, %29 : vector<64x128xf32>
    %31 = arith.negf %30 : vector<64x128xf32>
    %32 = math.exp %31 : vector<64x128xf32>
    %cst_17 = arith.constant 1.000000e+00 : f32
    %33 = vector.broadcast %cst_17 : f32 to vector<64x128xf32>
    %34 = arith.addf %33, %32 : vector<64x128xf32>
    %35 = arith.divf %33, %34 : vector<64x128xf32>
    %36 = arith.mulf %30, %35 : vector<64x128xf32>
    %37 = arith.mulf %36, %36 : vector<64x128xf32>
    %cst_18 = arith.constant dense<0.000000e+00> : vector<128xf32>
    %38 = vector.multi_reduction <add>, %37, %cst_18 [0] : vector<64x128xf32> to vector<128xf32>
    %39 = vector.shape_cast %38 : vector<128xf32> to vector<1x128xf32>
    %cst_19 = arith.constant 6.400000e+01 : f32
    %40 = vector.broadcast %cst_19 : f32 to vector<1x128xf32>
    %41 = arith.divf %39, %40 : vector<1x128xf32>
    %cst_20 = arith.constant 1.1920929E-7 : f32
    %42 = vector.broadcast %cst_20 : f32 to vector<1x128xf32>
    %43 = arith.addf %41, %42 : vector<1x128xf32>
    %44 = math.rsqrt %43 : vector<1x128xf32>
    %45 = vector.broadcast %44 : vector<1x128xf32> to vector<64x128xf32>
    %46 = arith.mulf %36, %45 : vector<64x128xf32>
    %c0_21 = arith.constant 0 : index
    %c0_22 = arith.constant 0 : index
    %47 = vector.load %arg8[%c0_21, %c0_22] : memref<200x64xf32, #tpu.memory_space<vmem>>, vector<200x64xf32>
    %cst_23 = arith.constant dense<0.000000e+00> : vector<200x128xf32>
    %48 = tpu.matmul %47, %46, %cst_23 {dimension_numbers = #tpu.dot_dimension_numbers<[1], [0], [0], [1], [0, 0, 1, 1], [], []>} : vector<200x64xf32>, vector<64x128xf32>, vector<200x128xf32> -> vector<200x128xf32>
    %cst_24 = arith.constant dense<0xFF800000> : vector<128xf32>
    %49 = vector.multi_reduction <maximumf>, %48, %cst_24 [0] : vector<200x128xf32> to vector<128xf32>
    %50 = vector.shape_cast %49 : vector<128xf32> to vector<1x128xf32>
    %51 = vector.broadcast %50 : vector<1x128xf32> to vector<200x128xf32>
    %52 = arith.subf %48, %51 : vector<200x128xf32>
    %53 = math.exp %52 : vector<200x128xf32>
    %c0_25 = arith.constant 0 : index
    %c0_26 = arith.constant 0 : index
    %54 = vector.load %arg9[%c0_25, %c0_26] : memref<8x200xf32, #tpu.memory_space<vmem>>, vector<8x200xf32>
    %cst_27 = arith.constant dense<0.000000e+00> : vector<8x128xf32>
    %55 = tpu.matmul %54, %53, %cst_27 {dimension_numbers = #tpu.dot_dimension_numbers<[1], [0], [0], [1], [0, 0, 1, 1], [], []>} : vector<8x200xf32>, vector<200x128xf32>, vector<8x128xf32> -> vector<8x128xf32>
    %56 = vector.extract_strided_slice %55 {offsets = [0, 0], sizes = [1, 128], strides = [1, 1]} : vector<8x128xf32> to vector<1x128xf32>
    %57 = vector.extract_strided_slice %55 {offsets = [1, 0], sizes = [1, 128], strides = [1, 1]} : vector<8x128xf32> to vector<1x128xf32>
    %58 = tpu.reciprocal %57 : vector<1x128xf32> -> vector<1x128xf32>
    %59 = arith.mulf %56, %58 : vector<1x128xf32>
    %60 = vector.shape_cast %59 : vector<1x128xf32> to vector<1x1x128xf32>
    %c0_28 = arith.constant 0 : index
    %c0_29 = arith.constant 0 : index
    %c0_30 = arith.constant 0 : index
    %61 = vector.load %arg10[%c0_28, %c0_29, %c0_30] : memref<1x1x128xf32, #tpu.memory_space<vmem>>, vector<1x1x128xf32>
    tpu.vector_store %arg10[%c0_28, %c0_29, %c0_30], %60 {strides = array<i32>} : memref<1x1x128xf32, #tpu.memory_space<vmem>>, vector<1x1x128xf32>,
    return
  }
  func.func @transform_0(%arg0: i32) -> (i32, i32, i32) {
    %c0_i32 = arith.constant 0 : i32
    %c0_i32_0 = arith.constant 0 : i32
    %c0_i32_1 = arith.constant 0 : i32
    return %arg0, %c0_i32, %c0_i32_0 : i32, i32, i32
  }
  func.func @transform_1(%arg0: i32) -> (i32, i32) {
    %c0_i32 = arith.constant 0 : i32
    %c0_i32_0 = arith.constant 0 : i32
    %c0_i32_1 = arith.constant 0 : i32
    return %c0_i32, %c0_i32_0 : i32, i32
  }
  func.func @transform_2(%arg0: i32) -> (i32, i32) {
    %c0_i32 = arith.constant 0 : i32
    %c0_i32_0 = arith.constant 0 : i32
    %c0_i32_1 = arith.constant 0 : i32
    return %c0_i32, %c0_i32_0 : i32, i32
  }
  func.func @transform_3(%arg0: i32) -> (i32, i32) {
    %c0_i32 = arith.constant 0 : i32
    %c0_i32_0 = arith.constant 0 : i32
    %c0_i32_1 = arith.constant 0 : i32
    return %c0_i32, %c0_i32_0 : i32, i32
  }
  func.func @transform_4(%arg0: i32) -> (i32, i32) {
    %c0_i32 = arith.constant 0 : i32
    %c0_i32_0 = arith.constant 0 : i32
    %c0_i32_1 = arith.constant 0 : i32
    return %c0_i32, %c0_i32_0 : i32, i32
  }
  func.func @transform_5(%arg0: i32) -> (i32, i32) {
    %c0_i32 = arith.constant 0 : i32
    %c0_i32_0 = arith.constant 0 : i32
    %c0_i32_1 = arith.constant 0 : i32
    return %c0_i32, %c0_i32_0 : i32, i32
  }
  func.func @transform_6(%arg0: i32) -> (i32, i32) {
    %c0_i32 = arith.constant 0 : i32
    %c0_i32_0 = arith.constant 0 : i32
    %c0_i32_1 = arith.constant 0 : i32
    return %c0_i32, %c0_i32_0 : i32, i32
  }
  func.func @transform_7(%arg0: i32) -> (i32, i32) {
    %c0_i32 = arith.constant 0 : i32
    %c0_i32_0 = arith.constant 0 : i32
    %c0_i32_1 = arith.constant 0 : i32
    return %c0_i32, %c0_i32_0 : i32, i32
  }
  func.func @transform_8(%arg0: i32) -> (i32, i32) {
    %c0_i32 = arith.constant 0 : i32
    %c0_i32_0 = arith.constant 0 : i32
    %c0_i32_1 = arith.constant 0 : i32
    return %c0_i32, %c0_i32_0 : i32, i32
  }
  func.func @transform_9(%arg0: i32) -> (i32, i32, i32) {
    %c0_i32 = arith.constant 0 : i32
    %c0_i32_0 = arith.constant 0 : i32
    %c0_i32_1 = arith.constant 0 : i32
    return %arg0, %c0_i32, %c0_i32_0 : i32, i32, i32
  }
}

</mosaic_0001>

<bundles_post_ra>
// kernel: tpu_custom_call.1
= control target key start
LH: loop header
LB: loop body
LE: loop exit
PB: predicated region body
PF: predicated region fallthrough
CT: control target
= control target key end

     0   :  { %v1672_v2 = vmov 0   ;;  %s2212_s0 = inlined_call_operand.vmem [shape: f32[1,1,128], index: 0, kind: input, shape index: {}]   ;;  %s2213_s1 = inlined_call_operand.vmem [shape: f32[64,1], index: 1, kind: input, shape index: {}]   ;;  %s2214_s2 = inlined_call_operand.vmem [shape: f32[64,1], index: 2, kind: input, shape index: {}]   ;;  %s2215_s3 = inlined_call_operand.vmem [shape: f32[64,64], index: 3, kind: input, shape index: {}]   ;;  %s2216_s4 = inlined_call_operand.vmem [shape: f32[64,1], index: 4, kind: input, shape index: {}]   ;;  %s2217_s5 = inlined_call_operand.vmem [shape: f32[64,64], index: 5, kind: input, shape index: {}]   ;;  %s2218_s6 = inlined_call_operand.vmem [shape: f32[64,1], index: 6, kind: input, shape index: {}]   ;;  %s2219_s7 = inlined_call_operand.vmem [shape: f32[200,64], index: 7, kind: input, shape index: {}]   ;;  %s2220_s8 = inlined_call_operand.vmem [shape: f32[8,200], index: 8, kind: input, shape index: {}]   ;;  %s2221_s9 = inlined_call_operand.hbm [shape: f32[1,1,128], index: 9, kind: output, shape index: {}]  }
   0x1   :  { %v103_v0 = vld [vmem:[%s2214_s2 + $0x38] sm:$0xff]  ;;  %1499 = vset.pattern.permute.xlu1 %v1672_v2  ;;  %1498 = vset.pattern.permute.xlu0 %v1672_v2  ;;  %v40_v3 = vld [vmem:[%s2213_s1 + $0x30] sm:$0xff]  ;;  %v39_v4 = vld [vmem:[%s2213_s1 + $0x28] sm:$0xff] }
   0x2   :  { %v41_v1 = vld [vmem:[%s2213_s1 + $0x38] sm:$0xff]  ;;  %141 = vperm.xlu1 %1499, %v103_v0   ;;  %v102_v5 = vld [vmem:[%s2214_s2 + $0x30] sm:$0xff]  ;;  %v38_v6 = vld [vmem:[%s2213_s1 + $0x20] sm:$0xff] }
   0x3   :  { %79 = vperm.xlu0 %1498, %v41_v1   ;;  %v101_v7 = vld [vmem:[%s2214_s2 + $0x28] sm:$0xff]  ;;  %v37_v8 = vld [vmem:[%s2213_s1 + $0x18] sm:$0xff] }
   0x6   :  { %69 = vperm.xlu1 %1499, %v39_v4  }
   0x7   :  { %74 = vperm.xlu0 %1498, %v40_v3  }
   0xa   :  { %64 = vperm.xlu1 %1499, %v38_v6  }
   0xb   :  { %136 = vperm.xlu0 %1498, %v102_v5  }
   0xc   :  { %14 = vsyncpa [#allocation3], 0  ;;  %v100_v9 = vld [vmem:[%s2214_s2 + $0x20] sm:$0xff]  ;;  %v36_v10 = vld [vmem:[%s2213_s1 + $0x10] sm:$0xff]  ;;  %vm264_vm0 = vcmask 523264   ;;  %vm1674_vm1 = vmmov 0  }
   0xd   :  { %v99_v11 = vld [vmem:[%s2214_s2 + $0x18] sm:$0xff]  ;;  %v35_v12 = vld [vmem:[%s2213_s1 + $0x8] sm:$0xff]  ;;  %v98_v13 = vld [vmem:[%s2214_s2 + $0x10] sm:$0xff]  ;;  %vm1121_vm2 = vcmask 588800  }
   0xe   :  { %59 = vperm.xlu1 %1499, %v37_v8   ;;  %v34_v14 = vld [vmem:[%s2213_s1] sm:$0xff]  ;;  %v97_v15 = vld [vmem:[%s2214_s2 + $0x8] sm:$0xff]  ;;  %v223_v17 = vld [vmem:[%s2216_s4 + $0x38] sm:$0xff] }
   0xf   :  { %131 = vperm.xlu0 %1498, %v101_v7   ;;  %v96_v16 = vld [vmem:[%s2214_s2] sm:$0xff]  ;;  %v222_v18 = vld [vmem:[%s2216_s4 + $0x30] sm:$0xff]  ;;  %v221_v19 = vld [vmem:[%s2216_s4 + $0x28] sm:$0xff] }
  0x10   :  { %v220_v20 = vld [vmem:[%s2216_s4 + $0x20] sm:$0xff]  ;;  %v219_v21 = vld [vmem:[%s2216_s4 + $0x18] sm:$0xff]  ;;  %v218_v22 = vld [vmem:[%s2216_s4 + $0x10] sm:$0xff] }
  0x11   :  { %v217_v23 = vld [vmem:[%s2216_s4 + $0x8] sm:$0xff]  ;;  %v216_v24 = vld [vmem:[%s2216_s4] sm:$0xff]  ;;  %v460_v27 = vld [vmem:[%s2218_s6 + $0x10] sm:$0xff] }
  0x12   :  { %54 = vperm.xlu1 %1499, %v36_v10   ;;  %v458_v25 = vld [vmem:[%s2218_s6] sm:$0xff]  ;;  %v459_v26 = vld [vmem:[%s2218_s6 + $0x8] sm:$0xff]  ;;  %v461_v28 = vld [vmem:[%s2218_s6 + $0x18] sm:$0xff] }
  0x13   :  { %126 = vperm.xlu0 %1498, %v100_v9   ;;  %v462_v29 = vld [vmem:[%s2218_s6 + $0x20] sm:$0xff]  ;;  %v463_v30 = vld [vmem:[%s2218_s6 + $0x28] sm:$0xff]  ;;  %v464_v31 = vld [vmem:[%s2218_s6 + $0x30] sm:$0xff] }
  0x14   :  { %v465_v32 = vld [vmem:[%s2218_s6 + $0x38] sm:$0xff]  ;;  %v208_v33 = vld [vmem:[%s2215_s3] sm:$0xff] }
  0x15   :  { %1363 = vmatprep.mubr.msk.f32.mxu1 %vm264_vm0, %v208_v33  ;;  %v1215_v34 = vld [vmem:[%s2212_s0] ss:$0 sm:$0xff]  ;;  %s1675_s0 = smov [#allocation2]  }
  0x16   :  { %49 = vperm.xlu1 %1499, %v35_v12   ;;  %s1207_s6 = sshll.u32 %s1675_s0, 4  ;;  %s1208_s6 = int_to_ptr.vmem [resolvable:$true] %s1207_s6 }
  0x17   :  { %121 = vperm.xlu0 %1498, %v99_v11   ;;  %s1650_s30 = scalar_lea.vmem %s1208_s6, 16  ;;  %p1655_p1 = scmp.lt.s32.totalorder %s1208_s6, %s1208_s6 }
  0x18   :  { %p1651_p0 = scmp.ne.s32.totalorder %s1208_s6, %s1650_s30 }
  0x1a   :  { %44 = vperm.xlu1 %1499, %v34_v14  }
  0x1b   :  { %116 = vperm.xlu0 %1498, %v98_v13  }
  0x1e   :  { %106 = vperm.xlu1 %1499, %v96_v16  }
  0x1f   :  { %111 = vperm.xlu0 %1498, %v97_v15  }
  0x22   :  { %256 = vperm.xlu1 %1499, %v222_v18  }
  0x23   :  { %261 = vperm.xlu0 %1498, %v223_v17  }
  0x26   :  { %246 = vperm.xlu1 %1499, %v220_v20  }
  0x27   :  { %251 = vperm.xlu0 %1498, %v221_v19  }
  0x2a   :  { %236 = vperm.xlu1 %1499, %v218_v22  }
  0x2b   :  { %241 = vperm.xlu0 %1498, %v219_v21  }
  0x2e   :  { %226 = vperm.xlu1 %1499, %v216_v24  }
  0x2f   :  { %231 = vperm.xlu0 %1498, %v217_v23  }
  0x32   :  { %473 = vperm.xlu1 %1499, %v459_v26  }
  0x33   :  { %468 = vperm.xlu0 %1498, %v458_v25  }
  0x36   :  { %483 = vperm.xlu1 %1499, %v461_v28  }
  0x37   :  { %478 = vperm.xlu0 %1498, %v460_v27  }
  0x3a   :  { %493 = vperm.xlu1 %1499, %v463_v30  }
  0x3b   :  { %488 = vperm.xlu0 %1498, %v462_v29  }
  0x3e   :  { %503 = vperm.xlu1 %1499, %v465_v32  }
  0x3f   :  { %498 = vperm.xlu0 %1498, %v464_v31  }
  0x7d   :  { %v142_v35 = vpop.permute.xlu1 %141 }
  0x7e   :  { %v80_v36 = vpop.permute.xlu0 %79 }
  0x7f   :  { %v95_v37 = vmul.f32 %v1215_v34, %v80_v36 }
  0x81   :  { %v151_v38 = vadd.f32 %v142_v35, %v95_v37  ;;  %v70_v40 = vpop.permute.xlu1 %69 }
  0x82   :  { %v75_v39 = vpop.permute.xlu0 %74  ;;  %v93_v46 = vmul.f32 %v1215_v34, %v70_v40 }
  0x83   :  { %v1223_v41 = vmul.f32 -1.442695, %v151_v38  ;;  %v94_v42 = vmul.f32 %v1215_v34, %v75_v39 }
  0x85   :  { %1500 = vpow2.f32 %v1223_v41  ;;  %v65_v44 = vpop.permute.xlu1 %64 }
  0x86   :  { %v137_v43 = vpop.permute.xlu0 %136  ;;  %v92_v51 = vmul.f32 %v1215_v34, %v65_v44  ;;  %v210_v44 = vld [vmem:[%s2215_s3 + $0x10] sm:$0xff] }
  0x87   :  { %v150_v45 = vadd.f32 %v137_v43, %v94_v42  ;;  %v209_v43 = vld [vmem:[%s2215_s3 + $0x8] sm:$0xff] }
  0x89   :  { %v1222_v47 = vmul.f32 -1.442695, %v150_v45  ;;  %v60_v49 = vpop.permute.xlu1 %59 }
  0x8a   :  { %v132_v48 = vpop.permute.xlu0 %131  ;;  %v91_v56 = vmul.f32 %v1215_v34, %v60_v49  ;;  %v215_v49 = vld [vmem:[%s2215_s3 + $0x38] sm:$0xff] }
  0x8b   :  { %1502 = vpow2.f32 %v1222_v47  ;;  %v149_v50 = vadd.f32 %v132_v48, %v93_v46  ;;  %v212_v46 = vld [vmem:[%s2215_s3 + $0x20] sm:$0xff]  ;;  %v213_v47 = vld [vmem:[%s2215_s3 + $0x28] sm:$0xff]  ;;  %v214_v48 = vld [vmem:[%s2215_s3 + $0x30] sm:$0xff] }
  0x8d   :  { %v1221_v52 = vmul.f32 -1.442695, %v149_v50  ;;  %v55_v54 = vpop.permute.xlu1 %54 }
  0x8e   :  { %v127_v53 = vpop.permute.xlu0 %126  ;;  %v90_v63 = vmul.f32 %v1215_v34, %v55_v54 }
  0x8f   :  { %1504 = vpow2.f32 %v1221_v52  ;;  %v148_v55 = vadd.f32 %v127_v53, %v92_v51 }
  0x91   :  { %v1220_v57 = vmul.f32 -1.442695, %v148_v55  ;;  %v50_v60 = vpop.permute.xlu1 %49 }
  0x92   :  { %v1501_v58 = vpop.eup %1500  ;;  %v122_v59 = vpop.permute.xlu0 %121  ;;  %v89_v6 = vmul.f32 %v1215_v34, %v50_v60 }
  0x93   :  { %v183_v61 = vadd.f32 1.0, %v1501_v58  ;;  %1506 = vpow2.f32 %v1220_v57  ;;  %v147_v62 = vadd.f32 %v122_v59, %v91_v56 }
  0x95   :  { %1508 = vrcp.f32 %v183_v61  ;;  %v1219_v0 = vmul.f32 -1.442695, %v147_v62  ;;  %v45_v2 = vpop.permute.xlu1 %44 }
  0x96   :  { %v117_v1 = vpop.permute.xlu0 %116  ;;  %v88_v8 = vmul.f32 %v1215_v34, %v45_v2 }
  0x97   :  { %1510 = vpow2.f32 %v1219_v0  ;;  %v146_v3 = vadd.f32 %v117_v1, %v90_v63 }
  0x98   :  { %v1503_v4 = vpop.eup %1502 }
  0x99   :  { %v182_v5 = vadd.f32 1.0, %v1503_v4  ;;  %v1218_v7 = vmul.f32 -1.442695, %v146_v3  ;;  %v107_v10 = vpop.permute.xlu1 %106 }
  0x9a   :  { %v112_v9 = vpop.permute.xlu0 %111  ;;  %v144_v12 = vadd.f32 %v107_v10, %v88_v8 }
  0x9b   :  { %1512 = vrcp.f32 %v182_v5  ;;  %v145_v11 = vadd.f32 %v112_v9, %v89_v6 }
  0x9c   :  { %v1505_v13 = vpop.eup %1504  ;;  %1514 = vpow2.f32 %v1218_v7  ;;  %v1216_v16 = vmul.f32 -1.442695, %v144_v12 }
  0x9d   :  { %v181_v14 = vadd.f32 1.0, %v1505_v13  ;;  %v1217_v15 = vmul.f32 -1.442695, %v145_v11  ;;  %v257_v52 = vpop.permute.xlu1 %256 }
  0x9e   :  { %v262_v51 = vpop.permute.xlu0 %261 }
  0x9f   :  { %1516 = vrcp.f32 %v181_v14 }
  0xa0   :  { %v1507_v17 = vpop.eup %1506  ;;  %1518 = vpow2.f32 %v1217_v15 }
  0xa1   :  { %v180_v18 = vadd.f32 1.0, %v1507_v17  ;;  %1520 = vpow2.f32 %v1216_v16  ;;  %v247_v56 = vpop.permute.xlu1 %246 }
  0xa2   :  { %v1509_v19 = vpop.eup %1508  ;;  %v252_v54 = vpop.permute.xlu0 %251 }
  0xa3   :  { %1522 = vrcp.f32 %v180_v18  ;;  %v207_v20 = vmul.f32 %v1509_v19, %v151_v38 }
  0xa4   :  { %v1511_v21 = vpop.eup %1510 }
  0xa5   :  { %v179_v22 = vadd.f32 1.0, %v1511_v21  ;;  %1347 = vmatprep.subr.mxu1 %v207_v20 }
  0xa6   :  { %1348 = vmatpush3.msra.mxu1 %v207_v20  ;;  %v242_v59 = vpop.permute.xlu0 %241 }
  0xa7   :  { %1524 = vrcp.f32 %v179_v22 }
  0xa8   :  { %v1513_v23 = vpop.eup %1512 }
  0xa9   :  { %v1515_v24 = vpop.eup %1514  ;;  %v206_v25 = vmul.f32 %v1513_v23, %v150_v45  ;;  %v211_v45 = vld [vmem:[%s2215_s3 + $0x18] sm:$0xff] }
  0xaa   :  { %v178_v26 = vadd.f32 1.0, %v1515_v24  ;;  %v232_v7 = vpop.permute.xlu0 %231 }
  0xab   :  { %1349 = vmatprep.subr.mxu1 %v206_v25 }
  0xac   :  { %v1517_v27 = vpop.eup %1516  ;;  %1526 = vrcp.f32 %v178_v26  ;;  %1350 = vmatpush3.msra.mxu1 %v206_v25 }
  0xad   :  { %v1519_v28 = vpop.eup %1518  ;;  %v205_v29 = vmul.f32 %v1517_v27, %v149_v50  ;;  %v450_v50 = vld [vmem:[%s2217_s5] sm:$0xff] }
  0xae   :  { %v1521_v30 = vpop.eup %1520  ;;  %v177_v31 = vadd.f32 1.0, %v1519_v28 }
  0xaf   :  { %v176_v32 = vadd.f32 1.0, %v1521_v30  ;;  %1351 = vmatprep.subr.mxu1 %v205_v29 }
  0xb0   :  { %v1523_v33 = vpop.eup %1522  ;;  %1528 = vrcp.f32 %v177_v31  ;;  %1352 = vmatpush3.msra.mxu1 %v205_v29 }
  0xb1   :  { %v204_v34 = vmul.f32 %v1523_v33, %v148_v55  ;;  %1530 = vrcp.f32 %v176_v32 }
  0xb3   :  { %1353 = vmatprep.subr.mxu1 %v204_v34 }
  0xb4   :  { %v1525_v35 = vpop.eup %1524  ;;  %1354 = vmatpush3.msra.mxu1 %v204_v34 }
  0xb5   :  { %v203_v36 = vmul.f32 %v1525_v35, %v147_v62  ;;  %v237_v62 = vpop.permute.xlu1 %236 }
  0xb7   :  { %1355 = vmatprep.subr.mxu1 %v203_v36 }
  0xb8   :  { %1356 = vmatpush3.msra.mxu1 %v203_v36 }
  0xb9   :  { %v1527_v37 = vpop.eup %1526  ;;  %v227_v13 = vpop.permute.xlu1 %226 }
  0xba   :  { %v202_v38 = vmul.f32 %v1527_v37, %v146_v3 }
  0xbc   :  { %1357 = vmatprep.subr.mxu1 %v202_v38 }
  0xbd   :  { %v1529_v39 = vpop.eup %1528  ;;  %1358 = vmatpush3.msra.mxu1 %v202_v38 }
  0xbe   :  { %v1531_v40 = vpop.eup %1530  ;;  %v201_v41 = vmul.f32 %v1529_v39, %v145_v11 }
  0xbf   :  { %v200_v42 = vmul.f32 %v1531_v40, %v144_v12 }
  0xc0   :  { %1359 = vmatprep.subr.mxu1 %v201_v41 }
  0xc1   :  { %1360 = vmatpush3.msra.mxu1 %v201_v41 }
  0xc2   :  { %1361 = vmatprep.subr.mxu1 %v200_v42 }
  0xc3   :  { %1362 = vmatpush3.msra.mxu1 %v200_v42 }
  0xc4   :  { %1364 = vmatmul.mubr.msk.f32.vlgmr.msra.gmra.mxu1 %vm264_vm0, %v209_v43 }
  0xc5   :  { %1366 = vmatprep.mubr.msk.f32.mxu1 %vm264_vm0, %v210_v44 }
  0xc8   :  { %1367 = vmatmul.mubr.msk.f32.gmra.mxu1 %vm264_vm0, %v211_v45 }
  0xc9   :  { %1369 = vmatprep.mubr.msk.f32.mxu1 %vm264_vm0, %v212_v46 }
  0xcc   :  { %1370 = vmatmul.mubr.msk.f32.gmra.mxu1 %vm264_vm0, %v213_v47 }
  0xcd   :  { %1372 = vmatprep.mubr.msk.f32.mxu1 %vm264_vm0, %v214_v48 }
  0xd0   :  { %1373 = vmatmul.mubr.msk.f32.gmra.mxu1 %vm264_vm0, %v215_v49 }
  0xd1   :  { %1391 = vmatprep.mubr.msk.f32.mxu1 %vm264_vm0, %v450_v50 }
 0x184   :  { %v1365_v53 = vpop.f32.mrf.mxu1 }
 0x185   :  { %v1866_v10 = vadd.f32 %v1365_v53, %v232_v7  ;;  %v453_v53 = vld [vmem:[%s2217_s5 + $0x18] sm:$0xff] }
 0x186   :  { %v355_v55 = vpop.f32.mrf.mxu1 }
 0x187   :  { %v356_v14 = vadd.f32 %v355_v55, %v227_v13  ;;  %v1233_v17 = vmul.f32 -1.442695, %v1866_v10  ;;  %v455_v55 = vld [vmem:[%s2217_s5 + $0x28] sm:$0xff] }
 0x188   :  { %v1368_v57 = vpop.f32.mrf.mxu1 }
 0x189   :  { %v1861_v63 = vadd.f32 %v1368_v57, %v242_v59  ;;  %v1232_v18 = vmul.f32 -1.442695, %v356_v14  ;;  %v457_v57 = vld [vmem:[%s2217_s5 + $0x38] sm:$0xff]  ;;  %v474_v59 = vpop.permute.xlu1 %473 }
 0x18a   :  { %v365_v58 = vpop.f32.mrf.mxu1 }
 0x18b   :  { %v1863_v4 = vadd.f32 %v365_v58, %v237_v62  ;;  %v1235_v8 = vmul.f32 -1.442695, %v1861_v63  ;;  %v1673_v58 = vmov 0.0  }
 0x18c   :  { %v1371_v60 = vpop.f32.mrf.mxu1  ;;  %1403 = vmatprep.subr.mxu0 %v1673_v58  ;;  %1419 = vmatprep.mubr.msk.f32.mxu0 %vm1674_vm1, %v1673_v58 }
 0x18d   :  { %v381_v61 = vadd.f32 %v1371_v60, %v252_v54  ;;  %v1234_v15 = vmul.f32 -1.442695, %v1863_v4  ;;  %v454_v54 = vld [vmem:[%s2217_s5 + $0x20] sm:$0xff]  ;;  %v469_v60 = vpop.permute.xlu0 %468 }
 0x18e   :  { %v375_v0 = vpop.f32.mrf.mxu1 }
 0x18f   :  { %v1237_v1 = vmul.f32 -1.442695, %v381_v61  ;;  %v376_v2 = vadd.f32 %v375_v0, %v247_v56  ;;  %v456_v56 = vld [vmem:[%s2217_s5 + $0x30] sm:$0xff] }
 0x190   :  { %v1374_v3 = vpop.f32.mrf.mxu1 }
 0x191   :  { %v1236_v5 = vmul.f32 -1.442695, %v376_v2  ;;  %v391_v6 = vadd.f32 %v1374_v3, %v262_v51  ;;  %1532 = vpow2.f32 %v1237_v1  ;;  %v451_v51 = vld [vmem:[%s2217_s5 + $0x8] sm:$0xff]  ;;  %v479_v0 = vpop.permute.xlu0 %478 }
 0x192   :  { %v385_v9 = vpop.f32.mrf.mxu1 }
 0x193   :  { %v1239_v11 = vmul.f32 -1.442695, %v391_v6  ;;  %v386_v12 = vadd.f32 %v385_v9, %v257_v52  ;;  %1534 = vpow2.f32 %v1236_v5  ;;  %v452_v52 = vld [vmem:[%s2217_s5 + $0x10] sm:$0xff]  ;;  %s1654_s5 = scalar_lea.vmem %s1208_s6, 32 }
 0x194   :  { %p1656_p2 = scmp.lt.s32.totalorder %s1654_s5, %s1650_s30 }
 0x195   :  { %1536 = vpow2.f32 %v1239_v11  ;;  %v1238_v16 = vmul.f32 -1.442695, %v386_v12  ;;  %v489_v11 = vpop.permute.xlu0 %488 }
 0x196   :  { %1538 = vpow2.f32 %v1235_v8  ;;  %p1657_p3 = por %p1656_p2, %p1655_p1 }
 0x197   :  { %1540 = vpow2.f32 %v1238_v16 }
 0x198   :  { %1542 = vpow2.f32 %v1234_v15  ;;  %p1658_p4 = pnand %p1657_p3, %p1651_p0 }
 0x199   :  { %1544 = vpow2.f32 %v1233_v17 }
 0x19a   :  { %1546 = vpow2.f32 %v1232_v18 }
 0x19e   :  { %v1533_v19 = vpop.eup %1532 }
 0x19f   :  { %v423_v22 = vadd.f32 1.0, %v1533_v19 }
 0x1a0   :  { %v1535_v20 = vpop.eup %1534 }
 0x1a1   :  { %v422_v26 = vadd.f32 1.0, %v1535_v20 }
 0x1a2   :  { %v1537_v21 = vpop.eup %1536 }
 0x1a3   :  { %v1539_v23 = vpop.eup %1538  ;;  %v425_v24 = vadd.f32 1.0, %v1537_v21 }
 0x1a4   :  { %v1541_v25 = vpop.eup %1540  ;;  %v421_v29 = vadd.f32 1.0, %v1539_v23 }
 0x1a5   :  { %1548 = vrcp.f32 %v425_v24  ;;  %v424_v27 = vadd.f32 1.0, %v1541_v25  ;;  %v1543_v28 = vpop.eup %1542 }
 0x1a6   :  { %1550 = vrcp.f32 %v423_v22  ;;  %v1545_v30 = vpop.eup %1544  ;;  %v420_v31 = vadd.f32 1.0, %v1543_v28  ;;  %v499_v22 = vpop.permute.xlu0 %498 }
 0x1a7   :  { %1552 = vrcp.f32 %v424_v27  ;;  %v1547_v32 = vpop.eup %1546  ;;  %v419_v33 = vadd.f32 1.0, %v1545_v30 }
 0x1a8   :  { %1554 = vrcp.f32 %v422_v26  ;;  %v418_v34 = vadd.f32 1.0, %v1547_v32 }
 0x1a9   :  { %1556 = vrcp.f32 %v421_v29 }
 0x1aa   :  { %1558 = vrcp.f32 %v420_v31 }
 0x1ab   :  { %1560 = vrcp.f32 %v419_v33 }
 0x1ac   :  { %1562 = vrcp.f32 %v418_v34 }
 0x1b2   :  { %v1549_v35 = vpop.eup %1548 }
 0x1b3   :  { %v1551_v36 = vpop.eup %1550  ;;  %v449_v37 = vmul.f32 %v1549_v35, %v391_v6 }
 0x1b4   :  { %v1553_v38 = vpop.eup %1552  ;;  %v447_v41 = vmul.f32 %v1551_v36, %v381_v61  ;;  %v484_v61 = vpop.permute.xlu1 %483 }
 0x1b5   :  { %v448_v39 = vmul.f32 %v1553_v38, %v386_v12  ;;  %1375 = vmatprep.subr.mxu1 %v449_v37  ;;  %v1555_v40 = vpop.eup %1554 }
 0x1b6   :  { %1376 = vmatpush3.msra.mxu1 %v449_v37  ;;  %v1557_v42 = vpop.eup %1556  ;;  %v446_v43 = vmul.f32 %v1555_v40, %v376_v2 }
 0x1b7   :  { %1377 = vmatprep.subr.mxu1 %v448_v39  ;;  %v1559_v44 = vpop.eup %1558  ;;  %v445_v45 = vmul.f32 %v1557_v42, %v1861_v63 }
 0x1b8   :  { %1378 = vmatpush3.msra.mxu1 %v448_v39  ;;  %v1561_v46 = vpop.eup %1560  ;;  %v444_v47 = vmul.f32 %v1559_v44, %v1863_v4  ;;  %v494_v7 = vpop.permute.xlu1 %493 }
 0x1b9   :  { %1379 = vmatprep.subr.mxu1 %v447_v41  ;;  %v1563_v48 = vpop.eup %1562  ;;  %v443_v49 = vmul.f32 %v1561_v46, %v1866_v10 }
 0x1ba   :  { %1380 = vmatpush3.msra.mxu1 %v447_v41  ;;  %v442_v50 = vmul.f32 %v1563_v48, %v356_v14 }
 0x1bb   :  { %1381 = vmatprep.subr.mxu1 %v446_v43 }
 0x1bc   :  { %1382 = vmatpush3.msra.mxu1 %v446_v43  ;;  %v504_v18 = vpop.permute.xlu1 %503 }
 0x1bd   :  { %1383 = vmatprep.subr.mxu1 %v445_v45 }
 0x1be   :  { %1384 = vmatpush3.msra.mxu1 %v445_v45 }
 0x1bf   :  { %1385 = vmatprep.subr.mxu1 %v444_v47 }
 0x1c0   :  { %1386 = vmatpush3.msra.mxu1 %v444_v47 }
 0x1c1   :  { %1387 = vmatprep.subr.mxu1 %v443_v49 }
 0x1c2   :  { %1388 = vmatpush3.msra.mxu1 %v443_v49 }
 0x1c3   :  { %1389 = vmatprep.subr.mxu1 %v442_v50 }
 0x1c4   :  { %1390 = vmatpush3.msra.mxu1 %v442_v50 }
 0x1c5   :  { %1392 = vmatmul.mubr.msk.f32.vlgmr.msra.gmra.mxu1 %vm264_vm0, %v451_v51  ;;  %1125 = vmatprep.subr.mxu1 %v1673_v58 }
 0x1c6   :  { %1394 = vmatprep.mubr.msk.f32.mxu1 %vm264_vm0, %v452_v52 }
 0x1c9   :  { %1395 = vmatmul.mubr.msk.f32.gmra.mxu1 %vm264_vm0, %v453_v53 }
 0x1ca   :  { %1397 = vmatprep.mubr.msk.f32.mxu1 %vm264_vm0, %v454_v54 }
 0x1cd   :  { %1398 = vmatmul.mubr.msk.f32.gmra.mxu1 %vm264_vm0, %v455_v55 }
 0x1ce   :  { %1400 = vmatprep.mubr.msk.f32.mxu1 %vm264_vm0, %v456_v56 }
 0x1d1   :  { %1401 = vmatmul.mubr.msk.f32.gmra.mxu1 %vm264_vm0, %v457_v57 }
 0x285   :  { %v1393_v62 = vpop.f32.mrf.mxu1 }
 0x286   :  { %v602_v63 = vadd.f32 %v1393_v62, %v474_v59 }
 0x287   :  { %v596_v1 = vpop.f32.mrf.mxu1 }
 0x288   :  { %v1249_v2 = vmul.f32 -1.442695, %v602_v63  ;;  %v597_v3 = vadd.f32 %v596_v1, %v469_v60 }
 0x289   :  { %v1396_v4 = vpop.f32.mrf.mxu1 }
 0x28a   :  { %1564 = vpow2.f32 %v1249_v2  ;;  %v1248_v5 = vmul.f32 -1.442695, %v597_v3  ;;  %v612_v6 = vadd.f32 %v1396_v4, %v484_v61 }
 0x28b   :  { %v606_v8 = vpop.f32.mrf.mxu1 }
 0x28c   :  { %1566 = vpow2.f32 %v1248_v5  ;;  %v1251_v9 = vmul.f32 -1.442695, %v612_v6  ;;  %v607_v10 = vadd.f32 %v606_v8, %v479_v0 }
 0x28d   :  { %v1399_v12 = vpop.f32.mrf.mxu1 }
 0x28e   :  { %1568 = vpow2.f32 %v1251_v9  ;;  %v1250_v13 = vmul.f32 -1.442695, %v607_v10  ;;  %v622_v14 = vadd.f32 %v1399_v12, %v494_v7 }
 0x28f   :  { %v616_v15 = vpop.f32.mrf.mxu1 }
 0x290   :  { %1570 = vpow2.f32 %v1250_v13  ;;  %v1253_v16 = vmul.f32 -1.442695, %v622_v14  ;;  %v617_v17 = vadd.f32 %v616_v15, %v489_v11 }
 0x291   :  { %v1402_v19 = vpop.f32.mrf.mxu1 }
 0x292   :  { %1572 = vpow2.f32 %v1253_v16  ;;  %v1252_v20 = vmul.f32 -1.442695, %v617_v17  ;;  %v632_v21 = vadd.f32 %v1402_v19, %v504_v18 }
 0x293   :  { %v626_v23 = vpop.f32.mrf.mxu1 }
 0x294   :  { %1574 = vpow2.f32 %v1252_v20  ;;  %v1255_v24 = vmul.f32 -1.442695, %v632_v21  ;;  %v627_v25 = vadd.f32 %v626_v23, %v499_v22 }
 0x296   :  { %1576 = vpow2.f32 %v1255_v24  ;;  %v1254_v26 = vmul.f32 -1.442695, %v627_v25 }
 0x297   :  { %v1565_v27 = vpop.eup %1564 }
 0x298   :  { %v660_v28 = vadd.f32 1.0, %v1565_v27  ;;  %1578 = vpow2.f32 %v1254_v26 }
 0x299   :  { %v1567_v29 = vpop.eup %1566 }
 0x29a   :  { %1580 = vrcp.f32 %v660_v28  ;;  %v659_v30 = vadd.f32 1.0, %v1567_v29  ;;  %v724_v28 = vld [vmem:[%s2219_s7] sm:$0xff]  ;;  %v725_v29 = vld [vmem:[%s2219_s7 + $0x8] sm:$0xff] }
 0x29b   :  { %v1569_v31 = vpop.eup %1568 }
 0x29c   :  { %1582 = vrcp.f32 %v659_v30  ;;  %v662_v32 = vadd.f32 1.0, %v1569_v31  ;;  %v726_v30 = vld [vmem:[%s2219_s7 + $0x10] sm:$0xff]  ;;  %v727_v31 = vld [vmem:[%s2219_s7 + $0x18] sm:$0xff] }
 0x29d   :  { %v1571_v33 = vpop.eup %1570 }
 0x29e   :  { %1584 = vrcp.f32 %v662_v32  ;;  %v661_v34 = vadd.f32 1.0, %v1571_v33  ;;  %v728_v32 = vld [vmem:[%s2219_s7 + $0x20] sm:$0xff]  ;;  %v729_v33 = vld [vmem:[%s2219_s7 + $0x28] sm:$0xff] }
 0x29f   :  { %v1573_v35 = vpop.eup %1572 }
 0x2a0   :  { %1586 = vrcp.f32 %v661_v34  ;;  %v664_v36 = vadd.f32 1.0, %v1573_v35  ;;  %v730_v34 = vld [vmem:[%s2219_s7 + $0x30] sm:$0xff]  ;;  %v731_v35 = vld [vmem:[%s2219_s7 + $0x38] sm:$0xff] }
 0x2a1   :  { %v1575_v37 = vpop.eup %1574 }
 0x2a2   :  { %1588 = vrcp.f32 %v664_v36  ;;  %v663_v38 = vadd.f32 1.0, %v1575_v37  ;;  %v732_v36 = vld [vmem:[%s2219_s7 + $0x40] sm:$0xff]  ;;  %v733_v37 = vld [vmem:[%s2219_s7 + $0x48] sm:$0xff] }
 0x2a3   :  { %v1577_v39 = vpop.eup %1576 }
 0x2a4   :  { %1590 = vrcp.f32 %v663_v38  ;;  %v666_v40 = vadd.f32 1.0, %v1577_v39  ;;  %v734_v38 = vld [vmem:[%s2219_s7 + $0x50] sm:$0xff]  ;;  %v735_v39 = vld [vmem:[%s2219_s7 + $0x58] sm:$0xff] }
 0x2a5   :  { %v1579_v41 = vpop.eup %1578 }
 0x2a6   :  { %1592 = vrcp.f32 %v666_v40  ;;  %v665_v42 = vadd.f32 1.0, %v1579_v41  ;;  %v736_v40 = vld [vmem:[%s2219_s7 + $0x60] sm:$0xff]  ;;  %v737_v41 = vld [vmem:[%s2219_s7 + $0x68] sm:$0xff] }
 0x2a7   :  { %v1581_v43 = vpop.eup %1580 }
 0x2a8   :  { %1594 = vrcp.f32 %v665_v42  ;;  %v684_v45 = vmul.f32 %v1581_v43, %v602_v63  ;;  %v738_v42 = vld [vmem:[%s2219_s7 + $0x70] sm:$0xff]  ;;  %v739_v43 = vld [vmem:[%s2219_s7 + $0x78] sm:$0xff] }
 0x2a9   :  { %v1583_v44 = vpop.eup %1582 }
 0x2aa   :  { %v683_v46 = vmul.f32 %v1583_v44, %v597_v3  ;;  %v692_v50 = vmul.f32 %v684_v45, %v684_v45  ;;  %v740_v44 = vld [vmem:[%s2219_s7 + $0x80] sm:$0xff] }
 0x2ab   :  { %v1585_v47 = vpop.eup %1584 }
 0x2ac   :  { %v691_v48 = vmul.f32 %v683_v46, %v683_v46  ;;  %v686_v51 = vmul.f32 %v1585_v47, %v612_v6  ;;  %v743_v47 = vld [vmem:[%s2219_s7 + $0x98] sm:$0xff] }
 0x2ad   :  { %v1587_v49 = vpop.eup %1586 }
 0x2ae   :  { %v685_v52 = vmul.f32 %v1587_v49, %v607_v10  ;;  %v699_v54 = vadd.f32 %v692_v50, %v691_v48  ;;  %v694_v57 = vmul.f32 %v686_v51, %v686_v51  ;;  %v744_v48 = vld [vmem:[%s2219_s7 + $0xa0] sm:$0xff]  ;;  %v745_v49 = vld [vmem:[%s2219_s7 + $0xa8] sm:$0xff]  ;;  %v746_v50 = vld [vmem:[%s2219_s7 + $0xb0] sm:$0xff] }
 0x2af   :  { %v1589_v53 = vpop.eup %1588 }
 0x2b0   :  { %v693_v55 = vmul.f32 %v685_v52, %v685_v52  ;;  %v688_v60 = vmul.f32 %v1589_v53, %v622_v14 }
 0x2b1   :  { %v1591_v56 = vpop.eup %1590 }
 0x2b2   :  { %v700_v59 = vadd.f32 %v699_v54, %v693_v55  ;;  %v687_v61 = vmul.f32 %v1591_v56, %v617_v17  ;;  %v696_v63 = vmul.f32 %v688_v60, %v688_v60 }
 0x2b3   :  { %v1593_v62 = vpop.eup %1592 }
 0x2b4   :  { %v695_v0 = vmul.f32 %v687_v61, %v687_v61  ;;  %v701_v1 = vadd.f32 %v700_v59, %v694_v57  ;;  %v690_v4 = vmul.f32 %v1593_v62, %v632_v21 }
 0x2b5   :  { %v1595_v2 = vpop.eup %1594 }
 0x2b6   :  { %v702_v3 = vadd.f32 %v701_v1, %v695_v0  ;;  %v689_v5 = vmul.f32 %v1595_v2, %v627_v25  ;;  %v698_v6 = vmul.f32 %v690_v4, %v690_v4 }
 0x2b8   :  { %v697_v7 = vmul.f32 %v689_v5, %v689_v5  ;;  %v703_v8 = vadd.f32 %v702_v3, %v696_v63 }
 0x2ba   :  { %v704_v9 = vadd.f32 %v703_v8, %v697_v7 }
 0x2bc   :  { %v705_v10 = vadd.f32 %v704_v9, %v698_v6 }
 0x2be   :  { %v706_v11 = vrot.slane %v705_v10, 4 }
 0x2c0   :  { %v707_v12 = vadd.f32 %v706_v11, %v705_v10 }
 0x2c2   :  { %v708_v13 = vrot.slane %v707_v12, 2 }
 0x2c4   :  { %v709_v15 = vadd.f32 %v708_v13, %v707_v12 }
 0x2c6   :  { %v710_v16 = vrot.slane %v709_v15, 1 }
 0x2c8   :  { %v711_v14 = vadd.f32 %v710_v16, %v709_v15 }
 0x2ca   :  { %v713_v17 = vmul.f32 0.015625, %v711_v14 }
 0x2cc   :  { %v714_v18 = vadd.f32 1.1920929e-07, %v713_v17 }
 0x2ce   :  { %1596 = vrsqrt.f32 %v714_v18  ;;  %v1120_v18 = vld [vmem:[%s2220_s8 + $0x8] sm:$0xff] }
 0x2cf   :  { %1281 = vmatprep.mubr.msk.f32.mxu1 %vm1121_vm2, %v1120_v18 }
 0x2db   :  { %v1597_v19 = vpop.eup %1596 }
 0x2dc   :  { %v723_v20 = vmul.f32 %v1597_v19, %v690_v4  ;;  %v722_v22 = vmul.f32 %v1597_v19, %v689_v5  ;;  %v721_v21 = vmul.f32 %v1597_v19, %v688_v60  ;;  %v720_v23 = vmul.f32 %v1597_v19, %v687_v61 }
 0x2dd   :  { %v719_v24 = vmul.f32 %v1597_v19, %v686_v51  ;;  %v718_v25 = vmul.f32 %v1597_v19, %v685_v52  ;;  %v717_v26 = vmul.f32 %v1597_v19, %v684_v45  ;;  %v716_v27 = vmul.f32 %v1597_v19, %v683_v46  ;;  %v741_v45 = vld [vmem:[%s2219_s7 + $0x88] sm:$0xff]  ;;  %v742_v46 = vld [vmem:[%s2219_s7 + $0x90] sm:$0xff]  ;;  %v747_v51 = vld [vmem:[%s2219_s7 + $0xb8] sm:$0xff] }
 0x2de   :  { %1404 = vmatpush3.msra.mxu0 %v723_v20  ;;  %v748_v52 = vld [vmem:[%s2219_s7 + $0xc0] sm:$0xff] }
 0x2df   :  { %1405 = vmatprep.subr.mxu0 %v1673_v58 }
 0x2e0   :  { %1406 = vmatpush3.msra.mxu0 %v722_v22 }
 0x2e1   :  { %1407 = vmatprep.subr.mxu0 %v1673_v58 }
 0x2e2   :  { %1408 = vmatpush3.msra.mxu0 %v721_v21 }
 0x2e3   :  { %1409 = vmatprep.subr.mxu0 %v1673_v58 }
 0x2e4   :  { %1410 = vmatpush3.msra.mxu0 %v720_v23 }
 0x2e5   :  { %1411 = vmatprep.subr.mxu0 %v1673_v58 }
 0x2e6   :  { %1412 = vmatpush3.msra.mxu0 %v719_v24 }
 0x2e7   :  { %1413 = vmatprep.subr.mxu0 %v1673_v58 }
 0x2e8   :  { %1414 = vmatpush3.msra.mxu0 %v718_v25 }
 0x2e9   :  { %1415 = vmatprep.subr.mxu0 %v1673_v58 }
 0x2ea   :  { %1416 = vmatpush3.msra.mxu0 %v717_v26 }
 0x2eb   :  { %1417 = vmatprep.subr.mxu0 %v1673_v58 }
 0x2ec   :  { %1418 = vmatpush3.msra.mxu0 %v716_v27 }
 0x2ed   :  { %1420 = vmatmul.mubr.msk.f32.vlgmr.msra.gmra.mxu0 %vm264_vm0, %v724_v28 }
 0x2ee   :  { %1422 = vmatprep.mubr.msk.f32.mxu0 %vm1674_vm1, %v1673_v58 }
 0x2f1   :  { %1423 = vmatmul.mubr.msk.f32.gmra.mxu0 %vm264_vm0, %v725_v29 }
 0x2f2   :  { %1425 = vmatprep.mubr.msk.f32.mxu0 %vm1674_vm1, %v1673_v58 }
 0x2f5   :  { %1426 = vmatmul.mubr.msk.f32.gmra.mxu0 %vm264_vm0, %v726_v30 }
 0x2f6   :  { %1428 = vmatprep.mubr.msk.f32.mxu0 %vm1674_vm1, %v1673_v58 }
 0x2f9   :  { %1429 = vmatmul.mubr.msk.f32.gmra.mxu0 %vm264_vm0, %v727_v31 }
 0x2fa   :  { %1431 = vmatprep.mubr.msk.f32.mxu0 %vm1674_vm1, %v1673_v58 }
 0x2fd   :  { %1432 = vmatmul.mubr.msk.f32.gmra.mxu0 %vm264_vm0, %v728_v32 }
 0x2fe   :  { %1434 = vmatprep.mubr.msk.f32.mxu0 %vm1674_vm1, %v1673_v58 }
 0x301   :  { %1435 = vmatmul.mubr.msk.f32.gmra.mxu0 %vm264_vm0, %v729_v33 }
 0x302   :  { %1437 = vmatprep.mubr.msk.f32.mxu0 %vm1674_vm1, %v1673_v58 }
 0x305   :  { %1438 = vmatmul.mubr.msk.f32.gmra.mxu0 %vm264_vm0, %v730_v34 }
 0x306   :  { %1440 = vmatprep.mubr.msk.f32.mxu0 %vm1674_vm1, %v1673_v58 }
 0x309   :  { %1441 = vmatmul.mubr.msk.f32.gmra.mxu0 %vm264_vm0, %v731_v35 }
 0x30a   :  { %1443 = vmatprep.mubr.msk.f32.mxu0 %vm1674_vm1, %v1673_v58 }
 0x30d   :  { %1444 = vmatmul.mubr.msk.f32.gmra.mxu0 %vm264_vm0, %v732_v36 }
 0x30e   :  { %1446 = vmatprep.mubr.msk.f32.mxu0 %vm1674_vm1, %v1673_v58 }
 0x311   :  { %1447 = vmatmul.mubr.msk.f32.gmra.mxu0 %vm264_vm0, %v733_v37 }
 0x312   :  { %1449 = vmatprep.mubr.msk.f32.mxu0 %vm1674_vm1, %v1673_v58 }
 0x315   :  { %1450 = vmatmul.mubr.msk.f32.gmra.mxu0 %vm264_vm0, %v734_v38 }
 0x316   :  { %1452 = vmatprep.mubr.msk.f32.mxu0 %vm1674_vm1, %v1673_v58 }
 0x319   :  { %1453 = vmatmul.mubr.msk.f32.gmra.mxu0 %vm264_vm0, %v735_v39 }
 0x31a   :  { %1455 = vmatprep.mubr.msk.f32.mxu0 %vm1674_vm1, %v1673_v58 }
 0x31d   :  { %1456 = vmatmul.mubr.msk.f32.gmra.mxu0 %vm264_vm0, %v736_v40 }
 0x31e   :  { %1458 = vmatprep.mubr.msk.f32.mxu0 %vm1674_vm1, %v1673_v58 }
 0x321   :  { %1459 = vmatmul.mubr.msk.f32.gmra.mxu0 %vm264_vm0, %v737_v41 }
 0x322   :  { %1461 = vmatprep.mubr.msk.f32.mxu0 %vm1674_vm1, %v1673_v58 }
 0x325   :  { %1462 = vmatmul.mubr.msk.f32.gmra.mxu0 %vm264_vm0, %v738_v42 }
 0x326   :  { %1464 = vmatprep.mubr.msk.f32.mxu0 %vm1674_vm1, %v1673_v58 }
 0x329   :  { %1465 = vmatmul.mubr.msk.f32.gmra.mxu0 %vm264_vm0, %v739_v43 }
 0x32a   :  { %1467 = vmatprep.mubr.msk.f32.mxu0 %vm1674_vm1, %v1673_v58 }
 0x32d   :  { %1468 = vmatmul.mubr.msk.f32.gmra.mxu0 %vm264_vm0, %v740_v44 }
 0x32e   :  { %1470 = vmatprep.mubr.msk.f32.mxu0 %vm1674_vm1, %v1673_v58 }
 0x331   :  { %1471 = vmatmul.mubr.msk.f32.gmra.mxu0 %vm264_vm0, %v741_v45 }
 0x332   :  { %1473 = vmatprep.mubr.msk.f32.mxu0 %vm1674_vm1, %v1673_v58 }
 0x335   :  { %1474 = vmatmul.mubr.msk.f32.gmra.mxu0 %vm264_vm0, %v742_v46 }
 0x336   :  { %1476 = vmatprep.mubr.msk.f32.mxu0 %vm1674_vm1, %v1673_v58 }
 0x339   :  { %1477 = vmatmul.mubr.msk.f32.gmra.mxu0 %vm264_vm0, %v743_v47 }
 0x33a   :  { %1479 = vmatprep.mubr.msk.f32.mxu0 %vm1674_vm1, %v1673_v58 }
 0x33d   :  { %1480 = vmatmul.mubr.msk.f32.gmra.mxu0 %vm264_vm0, %v744_v48 }
 0x33e   :  { %1482 = vmatprep.mubr.msk.f32.mxu0 %vm1674_vm1, %v1673_v58 }
 0x341   :  { %1483 = vmatmul.mubr.msk.f32.gmra.mxu0 %vm264_vm0, %v745_v49 }
 0x342   :  { %1485 = vmatprep.mubr.msk.f32.mxu0 %vm1674_vm1, %v1673_v58 }
 0x345   :  { %1486 = vmatmul.mubr.msk.f32.gmra.mxu0 %vm264_vm0, %v746_v50 }
 0x346   :  { %1488 = vmatprep.mubr.msk.f32.mxu0 %vm1674_vm1, %v1673_v58 }
 0x349   :  { %1489 = vmatmul.mubr.msk.f32.gmra.mxu0 %vm264_vm0, %v747_v51 }
 0x34a   :  { %1491 = vmatprep.mubr.msk.f32.mxu0 %vm1674_vm1, %v1673_v58 }
 0x34d   :  { %1492 = vmatmul.mubr.msk.f32.gmra.mxu0 %vm264_vm0, %v748_v52 }
 0x3ad   :  { %v2060_v53 = vpop.f32.mrf.mxu0 }
 0x3af   :  { %v1421_v54 = vpop.f32.mrf.mxu0 }
 0x3b1   :  { %v2062_v55 = vpop.f32.mrf.mxu0 }
 0x3b3   :  { %v1424_v56 = vpop.f32.mrf.mxu0 }
 0x3b5   :  { %v2064_v57 = vpop.f32.mrf.mxu0 }
 0x3b7   :  { %v1427_v59 = vpop.f32.mrf.mxu0 }
 0x3b9   :  { %v2066_v60 = vpop.f32.mrf.mxu0 }
 0x3bb   :  { %v1430_v61 = vpop.f32.mrf.mxu0 }
 0x3bd   :  { %v2068_v62 = vpop.f32.mrf.mxu0 }
 0x3be   :  { %v1014_v35 = vmax.f32 %v2060_v53, %v2068_v62 }
 0x3bf   :  { %v1433_v0 = vpop.f32.mrf.mxu0 }
 0x3c1   :  { %v2070_v1 = vpop.f32.mrf.mxu0 }
 0x3c2   :  { %v1015_v38 = vmax.f32 %v2062_v55, %v2070_v1 }
 0x3c3   :  { %v1436_v2 = vpop.f32.mrf.mxu0 }
 0x3c5   :  { %v2072_v63 = vpop.f32.mrf.mxu0 }
 0x3c6   :  { %v1016_v39 = vmax.f32 %v2064_v57, %v2072_v63 }
 0x3c7   :  { %v1439_v3 = vpop.f32.mrf.mxu0 }
 0x3c9   :  { %v2074_v4 = vpop.f32.mrf.mxu0 }
 0x3ca   :  { %v1017_v36 = vmax.f32 %v2066_v60, %v2074_v4 }
 0x3cb   :  { %v1442_v5 = vpop.f32.mrf.mxu0 }
 0x3cd   :  { %v2076_v7 = vpop.f32.mrf.mxu0 }
 0x3ce   :  { %v1018_v40 = vmax.f32 %v1014_v35, %v2076_v7 }
 0x3cf   :  { %v1445_v8 = vpop.f32.mrf.mxu0 }
 0x3d1   :  { %v2078_v6 = vpop.f32.mrf.mxu0 }
 0x3d2   :  { %v1019_v43 = vmax.f32 %v1015_v38, %v2078_v6 }
 0x3d3   :  { %v1448_v9 = vpop.f32.mrf.mxu0 }
 0x3d5   :  { %v2080_v10 = vpop.f32.mrf.mxu0 }
 0x3d6   :  { %v1020_v44 = vmax.f32 %v1016_v39, %v2080_v10 }
 0x3d7   :  { %v1451_v11 = vpop.f32.mrf.mxu0 }
 0x3d9   :  { %v2082_v12 = vpop.f32.mrf.mxu0 }
 0x3da   :  { %v1021_v41 = vmax.f32 %v1017_v36, %v2082_v12 }
 0x3db   :  { %v1454_v13 = vpop.f32.mrf.mxu0 }
 0x3dd   :  { %v2084_v15 = vpop.f32.mrf.mxu0 }
 0x3de   :  { %v1022_v45 = vmax.f32 %v1018_v40, %v2084_v15 }
 0x3df   :  { %v1457_v16 = vpop.f32.mrf.mxu0 }
 0x3e1   :  { %v2086_v14 = vpop.f32.mrf.mxu0 }
 0x3e2   :  { %v1023_v48 = vmax.f32 %v1019_v43, %v2086_v14 }
 0x3e3   :  { %v1460_v17 = vpop.f32.mrf.mxu0 }
 0x3e5   :  { %v960_v19 = vpop.f32.mrf.mxu0 }
 0x3e6   :  { %v1024_v49 = vmax.f32 %v1020_v44, %v960_v19 }
 0x3e7   :  { %v1463_v20 = vpop.f32.mrf.mxu0 }
 0x3e9   :  { %v965_v22 = vpop.f32.mrf.mxu0 }
 0x3ea   :  { %v1025_v46 = vmax.f32 %v1021_v41, %v965_v22 }
 0x3eb   :  { %v1466_v21 = vpop.f32.mrf.mxu0 }
 0x3ed   :  { %v2091_v23 = vpop.f32.mrf.mxu0 }
 0x3ee   :  { %v1026_v50 = vmax.f32 %v1022_v45, %v2091_v23 }
 0x3ef   :  { %v1469_v24 = vpop.f32.mrf.mxu0 }
 0x3f1   :  { %v2093_v25 = vpop.f32.mrf.mxu0 }
 0x3f2   :  { %v1027_v54 = vmax.f32 %v1023_v48, %v2093_v25 }
 0x3f3   :  { %v1472_v26 = vpop.f32.mrf.mxu0 }
 0x3f5   :  { %v2095_v27 = vpop.f32.mrf.mxu0 }
 0x3f6   :  { %v1028_v56 = vmax.f32 %v1024_v49, %v2095_v27 }
 0x3f7   :  { %v1475_v28 = vpop.f32.mrf.mxu0 }
 0x3f9   :  { %v2097_v29 = vpop.f32.mrf.mxu0 }
 0x3fa   :  { %v1029_v51 = vmax.f32 %v1025_v46, %v2097_v29 }
 0x3fb   :  { %v1478_v30 = vpop.f32.mrf.mxu0 }
 0x3fd   :  { %v2099_v31 = vpop.f32.mrf.mxu0 }
 0x3fe   :  { %v1030_v59 = vmax.f32 %v1026_v50, %v2099_v31 }
 0x3ff   :  { %v1481_v32 = vpop.f32.mrf.mxu0 }
 0x401   :  { %v2101_v33 = vpop.f32.mrf.mxu0 }
 0x402   :  { %v1031_v2 = vmax.f32 %v1027_v54, %v2101_v33 }
 0x403   :  { %v1484_v34 = vpop.f32.mrf.mxu0 }
 0x405   :  { %v2107_v37 = vpop.f32.mrf.mxu0 }
 0x406   :  { %v1032_v3 = vmax.f32 %v1028_v56, %v2107_v37 }
 0x407   :  { %v1487_v42 = vpop.f32.mrf.mxu0 }
 0x409   :  { %v2118_v47 = vpop.f32.mrf.mxu0 }
 0x40a   :  { %v1033_v61 = vmax.f32 %v1029_v51, %v2118_v47 }
 0x40b   :  { %v1490_v52 = vpop.f32.mrf.mxu0 }
 0x40c   :  { %v1036_v9 = vmax.f32 %v1032_v3, %v1033_v61 }
 0x40d   :  { %v2127_v0 = vpop.f32.mrf.mxu0 }
 0x40e   :  { %v1034_v5 = vmax.f32 %v1030_v59, %v2127_v0 }
 0x40f   :  { %v1493_v8 = vpop.f32.mrf.mxu0 }
 0x410   :  { %v1035_v11 = vmax.f32 %v1034_v5, %v1031_v2 }
 0x412   :  { %v1037_v13 = vmax.f32 %v1035_v11, %v1036_v9 }
 0x414   :  { %v1038_v16 = vrot.slane %v1037_v13, 4 }
 0x416   :  { %v1039_v17 = vmax.f32 %v1037_v13, %v1038_v16 }
 0x418   :  { %v1040_v18 = vrot.slane %v1039_v17, 2 }
 0x41a   :  { %v1041_v20 = vmax.f32 %v1039_v17, %v1040_v18 }
 0x41c   :  { %v1042_v21 = vrot.slane %v1041_v20, 1 }
 0x41e   :  { %v2132_v24 = vmax.f32 %v1041_v20, %v1042_v21 }
 0x420   :  { %v1059_v26 = vsub.f32 %v965_v22, %v2132_v24  ;;  %v1058_v28 = vsub.f32 %v960_v19, %v2132_v24  ;;  %v1057_v30 = vsub.f32 %v2086_v14, %v2132_v24  ;;  %v1056_v35 = vsub.f32 %v2084_v15, %v2132_v24 }
 0x421   :  { %v1055_v38 = vsub.f32 %v2082_v12, %v2132_v24  ;;  %v1054_v22 = vsub.f32 %v2080_v10, %v2132_v24  ;;  %v1053_v14 = vsub.f32 %v2078_v6, %v2132_v24  ;;  %v1052_v15 = vsub.f32 %v2076_v7, %v2132_v24 }
 0x422   :  { %v1099_v32 = vmul.f32 1.442695, %v1059_v26  ;;  %v1097_v34 = vmul.f32 1.442695, %v1058_v28  ;;  %v1095_v36 = vmul.f32 1.442695, %v1057_v30  ;;  %v1051_v12 = vsub.f32 %v2074_v4, %v2132_v24 }
 0x423   :  { %v1093_v39 = vmul.f32 1.442695, %v1056_v35  ;;  %v1091_v19 = vmul.f32 1.442695, %v1055_v38  ;;  %v1089_v40 = vmul.f32 1.442695, %v1054_v22  ;;  %v1050_v10 = vsub.f32 %v2072_v63, %v2132_v24 }
 0x424   :  { %1598 = vpow2.f32 %v1099_v32  ;;  %v1087_v41 = vmul.f32 1.442695, %v1053_v14  ;;  %v1085_v42 = vmul.f32 1.442695, %v1052_v15  ;;  %v1083_v43 = vmul.f32 1.442695, %v1051_v12 }
 0x425   :  { %1600 = vpow2.f32 %v1097_v34  ;;  %v1049_v6 = vsub.f32 %v2070_v1, %v2132_v24  ;;  %v1081_v45 = vmul.f32 1.442695, %v1050_v10  ;;  %v1048_v7 = vsub.f32 %v2068_v62, %v2132_v24  ;;  %v1119_v14 = vld [vmem:[%s2220_s8] sm:$0xff] }
 0x426   :  { %1602 = vpow2.f32 %v1095_v36  ;;  %v1047_v63 = vsub.f32 %v2066_v60, %v2132_v24  ;;  %v1046_v49 = vsub.f32 %v2064_v57, %v2132_v24  ;;  %v1045_v51 = vsub.f32 %v2062_v55, %v2132_v24 }
 0x427   :  { %1604 = vpow2.f32 %v1093_v39  ;;  %v1079_v4 = vmul.f32 1.442695, %v1049_v6  ;;  %v1077_v1 = vmul.f32 1.442695, %v1048_v7  ;;  %v1044_v54 = vsub.f32 %v2060_v53, %v2132_v24 }
 0x428   :  { %1606 = vpow2.f32 %v1091_v19  ;;  %v1075_v62 = vmul.f32 1.442695, %v1047_v63  ;;  %v1073_v60 = vmul.f32 1.442695, %v1046_v49  ;;  %v1068_v57 = vsub.f32 %v2127_v0, %v2132_v24 }
 0x429   :  { %1608 = vpow2.f32 %v1089_v40  ;;  %v1071_v59 = vmul.f32 1.442695, %v1045_v51  ;;  %v1069_v55 = vmul.f32 1.442695, %v1044_v54  ;;  %v1067_v2 = vsub.f32 %v2118_v47, %v2132_v24 }
 0x42a   :  { %1610 = vpow2.f32 %v1087_v41  ;;  %v1117_v53 = vmul.f32 1.442695, %v1068_v57  ;;  %v1066_v0 = vsub.f32 %v2107_v37, %v2132_v24  ;;  %v1065_v9 = vsub.f32 %v2101_v33, %v2132_v24 }
 0x42b   :  { %1612 = vpow2.f32 %v1085_v42  ;;  %v1115_v8 = vmul.f32 1.442695, %v1067_v2  ;;  %v1064_v13 = vsub.f32 %v2099_v31, %v2132_v24  ;;  %v1063_v17 = vsub.f32 %v2097_v29, %v2132_v24 }
 0x42c   :  { %1614 = vpow2.f32 %v1083_v43  ;;  %v1113_v47 = vmul.f32 1.442695, %v1066_v0  ;;  %v1111_v37 = vmul.f32 1.442695, %v1065_v9  ;;  %v1062_v20 = vsub.f32 %v2095_v27, %v2132_v24 }
 0x42d   :  { %1616 = vpow2.f32 %v1081_v45  ;;  %v1109_v33 = vmul.f32 1.442695, %v1064_v13  ;;  %v1107_v31 = vmul.f32 1.442695, %v1063_v17  ;;  %v1061_v26 = vsub.f32 %v2093_v25, %v2132_v24 }
 0x42e   :  { %1618 = vpow2.f32 %v1079_v4  ;;  %v1105_v29 = vmul.f32 1.442695, %v1062_v20  ;;  %v1060_v30 = vsub.f32 %v2091_v23, %v2132_v24 }
 0x42f   :  { %1620 = vpow2.f32 %v1077_v1  ;;  %v1103_v27 = vmul.f32 1.442695, %v1061_v26 }
 0x430   :  { %1622 = vpow2.f32 %v1075_v62  ;;  %v1101_v25 = vmul.f32 1.442695, %v1060_v30 }
 0x431   :  { %v1599_v44 = vpop.eup %1598  ;;  %1624 = vpow2.f32 %v1073_v60 }
 0x432   :  { %1126 = vmatpush1.msra.mxu1 %v1599_v44  ;;  %v1601_v46 = vpop.eup %1600  ;;  %1626 = vpow2.f32 %v1071_v59 }
 0x433   :  { %1127 = vmatprep.subr.mxu1 %v1673_v58  ;;  %v1603_v48 = vpop.eup %1602  ;;  %1628 = vpow2.f32 %v1069_v55 }
 0x434   :  { %1128 = vmatpush1.msra.mxu1 %v1601_v46  ;;  %v1605_v50 = vpop.eup %1604  ;;  %1630 = vpow2.f32 %v1117_v53 }
 0x435   :  { %1129 = vmatprep.subr.mxu1 %v1673_v58  ;;  %v1607_v52 = vpop.eup %1606  ;;  %1632 = vpow2.f32 %v1115_v8 }
 0x436   :  { %1130 = vmatpush1.msra.mxu1 %v1603_v48  ;;  %v1609_v56 = vpop.eup %1608  ;;  %1634 = vpow2.f32 %v1113_v47 }
 0x437   :  { %1131 = vmatprep.subr.mxu1 %v1673_v58  ;;  %v1611_v61 = vpop.eup %1610  ;;  %1636 = vpow2.f32 %v1111_v37 }
 0x438   :  { %1132 = vmatpush1.msra.mxu1 %v1605_v50  ;;  %v1613_v3 = vpop.eup %1612  ;;  %1638 = vpow2.f32 %v1109_v33 }
 0x439   :  { %1133 = vmatprep.subr.mxu1 %v1673_v58  ;;  %v1615_v5 = vpop.eup %1614  ;;  %1640 = vpow2.f32 %v1107_v31 }
 0x43a   :  { %1134 = vmatpush1.msra.mxu1 %v1607_v52  ;;  %v1617_v11 = vpop.eup %1616  ;;  %1642 = vpow2.f32 %v1105_v29 }
 0x43b   :  { %1135 = vmatprep.subr.mxu1 %v1673_v58  ;;  %v1619_v16 = vpop.eup %1618  ;;  %1644 = vpow2.f32 %v1103_v27 }
 0x43c   :  { %1136 = vmatpush1.msra.mxu1 %v1609_v56  ;;  %v1621_v18 = vpop.eup %1620  ;;  %1646 = vpow2.f32 %v1101_v25 }
 0x43d   :  { %1137 = vmatprep.subr.mxu1 %v1673_v58  ;;  %v1623_v21 = vpop.eup %1622 }
 0x43e   :  { %1138 = vmatpush1.msra.mxu1 %v1611_v61  ;;  %v1625_v28 = vpop.eup %1624 }
 0x43f   :  { %1139 = vmatprep.subr.mxu1 %v1673_v58  ;;  %v1627_v32 = vpop.eup %1626 }
 0x440   :  { %1140 = vmatpush1.msra.mxu1 %v1613_v3  ;;  %v1629_v34 = vpop.eup %1628 }
 0x441   :  { %1141 = vmatprep.subr.mxu1 %v1673_v58  ;;  %v1631_v35 = vpop.eup %1630 }
 0x442   :  { %1142 = vmatpush1.msra.mxu1 %v1615_v5  ;;  %v1633_v36 = vpop.eup %1632 }
 0x443   :  { %1143 = vmatprep.subr.mxu1 %v1673_v58  ;;  %v1635_v23 = vpop.eup %1634 }
 0x444   :  { %1144 = vmatpush1.msra.mxu1 %v1617_v11  ;;  %v1637_v24 = vpop.eup %1636 }
 0x445   :  { %1145 = vmatprep.subr.mxu1 %v1673_v58  ;;  %v1639_v38 = vpop.eup %1638 }
 0x446   :  { %1146 = vmatpush1.msra.mxu1 %v1619_v16  ;;  %v1641_v39 = vpop.eup %1640 }
 0x447   :  { %1147 = vmatprep.subr.mxu1 %v1673_v58  ;;  %v1643_v22 = vpop.eup %1642 }
 0x448   :  { %1148 = vmatpush1.msra.mxu1 %v1621_v18  ;;  %v1645_v19 = vpop.eup %1644 }
 0x449   :  { %1149 = vmatprep.subr.mxu1 %v1673_v58  ;;  %v1647_v40 = vpop.eup %1646 }
 0x44a   :  { %1150 = vmatpush1.msra.mxu1 %v1623_v21 }
 0x44b   :  { %1151 = vmatprep.subr.mxu1 %v1673_v58 }
 0x44c   :  { %1152 = vmatpush1.msra.mxu1 %v1625_v28 }
 0x44d   :  { %1153 = vmatprep.subr.mxu1 %v1673_v58 }
 0x44e   :  { %1154 = vmatpush1.msra.mxu1 %v1627_v32 }
 0x44f   :  { %1155 = vmatprep.subr.mxu1 %v1673_v58 }
 0x450   :  { %1156 = vmatpush1.msra.mxu1 %v1629_v34 }
 0x451   :  { %1171 = vmatprep.subr.mxu1 %v1673_v58 }
 0x452   :  { %1172 = vmatpush2.msra.mxu1 %v1631_v35 }
 0x453   :  { %1173 = vmatprep.subr.mxu1 %v1673_v58 }
 0x454   :  { %1174 = vmatpush2.msra.mxu1 %v1633_v36 }
 0x455   :  { %1175 = vmatprep.subr.mxu1 %v1673_v58 }
 0x456   :  { %1176 = vmatpush2.msra.mxu1 %v1635_v23 }
 0x457   :  { %1177 = vmatprep.subr.mxu1 %v1673_v58 }
 0x458   :  { %1178 = vmatpush2.msra.mxu1 %v1637_v24 }
 0x459   :  { %1179 = vmatprep.subr.mxu1 %v1673_v58 }
 0x45a   :  { %1180 = vmatpush2.msra.mxu1 %v1639_v38 }
 0x45b   :  { %1181 = vmatprep.subr.mxu1 %v1673_v58 }
 0x45c   :  { %1182 = vmatpush2.msra.mxu1 %v1641_v39 }
 0x45d   :  { %1183 = vmatprep.subr.mxu1 %v1673_v58 }
 0x45e   :  { %1184 = vmatpush2.msra.mxu1 %v1643_v22 }
 0x45f   :  { %1185 = vmatprep.subr.mxu1 %v1673_v58 }
 0x460   :  { %1186 = vmatpush2.msra.mxu1 %v1645_v19 }
 0x461   :  { %1187 = vmatprep.subr.mxu1 %v1673_v58 }
 0x462   :  { %1188 = vmatpush2.msra.mxu1 %v1647_v40 }
 0x463   :  { %1190 = vmatmul.mubr.f32.vlgmr.msra.gmra.mxu1 %v1119_v14 }
 0x523   :  { %v1191_v15 = vpop.f32.mrf.mxu1 }
 0x524   :  { %1648 = vrcp.f32 %v1191_v15 }
 0x525   :  { %v1193_v41 = vpop.f32.mrf.mxu1 }
 0x531   :  { %v1649_v12 = vpop.eup %1648 }
 0x532   :  { %v1197_v42 = vrot.slane %v1649_v12, 1 }
 0x534   :  { %v1199_v10 = vmul.f32 %v1197_v42, %v1191_v15 }
 0x536   :  { %1200 = vst [vmem:[#allocation2] sm:$0x1] %v1199_v10 }
 0x537   :  { %1661 = shalt.err (!%p1658_p4)
}
 0x538   :  { %1210 = dma.vmem_to_hbm [thread:$0]  %s1208_s6, 16, %s2221_s9, [#allocation3]  }
 0x539   :  { %1670 = dma.done.wait [#allocation3], 16  }
 0x53a   :  { %1671 = vsyncadd [#allocation3], 4294967280 }
 0x53b   :  { %1214 = vsyncpa [#allocation3], 1 }

</bundles_post_ra>
